<compile_context>
chip_gen: v6e
topology: v6e:2x2x1
jax: 0.10.0
libtpu: 0.0.40
codegen_flags: <defaults>
</compile_context>

<pallas_src>
import functools

import jax
import jax.numpy as jnp
from jax import lax
from jax.experimental import pallas as pl
from jax.experimental.pallas import tpu as pltpu


def _round_up(x, m):
    return ((x + m - 1) // m) * m


def _silu(x):
    return x * jax.nn.sigmoid(x)


def _softplus_stable(x):
    # log(1 + exp(x)), numerically stable; EUP exp/log only.
    return jnp.maximum(x, 0.0) + jnp.log(1.0 + jnp.exp(-jnp.abs(x)))


def infograph_kernel(seg_ref, x_ref, counts_ref,
                     w1g_ref, b1g_ref, w2g_ref, b2g_ref,
                     loss_ref,
                     gsum_ref, projcat_ref, acc_ref,
                     *, inv_n):
    phase = pl.program_id(0)
    t = pl.program_id(1)
    last_t = pl.num_programs(1) - 1

    G = gsum_ref.shape[0]
    tn = x_ref.shape[0]

    @pl.when(jnp.logical_and(phase == 0, t == 0))
    def _init():
        gsum_ref[...] = jnp.zeros_like(gsum_ref)
        acc_ref[...] = jnp.zeros_like(acc_ref)

    # ---------------- phase 0: segment-sum of node features per graph --------
    @pl.when(phase == 0)
    def _accum_graph_sum():
        seg = seg_ref[...]                                   # [TN, 1] int32
        gid = lax.broadcasted_iota(jnp.int32, (tn, G), 1)
        # one-hot built on-chip; padded rows (seg == 2G) are all-zero -> masked.
        a = (gid == seg).astype(jnp.bfloat16)                # [TN, G]
        # A^T @ x without materializing A^T: contract the node (tile) axis.
        gsum_ref[...] += lax.dot_general(
            a, x_ref[...],
            dimension_numbers=(((0,), (0,)), ((), ())),
            preferred_element_type=jnp.float32)

    # ------------- phase 0 boundary: scatter_mean normalize + graph_dec ------
    @pl.when(jnp.logical_and(phase == 0, t == last_t))
    def _graph_dec():
        inv_cnt = pl.reciprocal(jnp.maximum(counts_ref[...], 1.0),
                                approx=True)                       # [G, 1] f32
        graph_rep = (gsum_ref[...] * inv_cnt).astype(jnp.bfloat16)  # [G, H]
        h = jnp.dot(graph_rep, w1g_ref[...],
                    preferred_element_type=jnp.float32) + b1g_ref[...]
        h = h * jax.nn.sigmoid(h)                                   # SiLU, f32
        proj = jnp.dot(h.astype(jnp.bfloat16), w2g_ref[...],
                       preferred_element_type=jnp.float32) + b2g_ref[...]  # [G,H]
        # neg_index = [1, 2, ..., G-1, 0]  ->  rotate graph rows by one.
        nproj = jnp.concatenate([proj[1:], proj[:1]], axis=0)       # [G, H]
        cat = jnp.concatenate([proj, nproj], axis=0)                # [2G, H]
        # pre-transpose once so phase 1 is a plain K=H matmul per tile.
        projcat_ref[...] = cat.T.astype(projcat_ref.dtype)          # [H, 2G]

    # ---------------- phase 1: scores + BCE-with-logits accumulation ---------
    @pl.when(phase == 1)
    def _score():
        x = x_ref[...]                                       # [TN, H] bf16
        seg = seg_ref[...]                                   # [TN, 1] int32
        # single matmul, contraction over H (proper MXU K), pos & neg together.
        s = jnp.dot(x, projcat_ref[...],
                    preferred_element_type=jnp.float32)      # [TN, 2G]
        gid2 = lax.broadcasted_iota(jnp.int32, (tn, 2 * G), 1)
        mask_pos = (gid2 == seg).astype(jnp.float32)         # hot in [0, G)
        mask_neg = (gid2 == (seg + G)).astype(jnp.float32)   # hot in [G, 2G)
        pos_score = jnp.sum(s * mask_pos, axis=-1, keepdims=True)   # [TN, 1]
        neg_score = jnp.sum(s * mask_neg, axis=-1, keepdims=True)   # [TN, 1]
        valid = (seg < G).astype(jnp.float32)                # 0 for padded rows
        per_node = (_softplus_stable(-pos_score)
                    + _softplus_stable(neg_score)) * valid
        acc_ref[...] += jnp.sum(per_node, axis=0, keepdims=True)    # [1, 1]

    @pl.when(jnp.logical_and(phase == 1, t == last_t))
    def _finalize():
        loss_ref[...] = acc_ref[...] * inv_n


def infograph_loss(node_rep, node2graph, num_graphs, params, *, tile_n=None):
    """InfoGraph loss given node representations (pred_fea) and graph ids."""
    N, H = node_rep.shape
    G = int(num_graphs)

    x_bf = node_rep.astype(jnp.bfloat16)
    seg = node2graph.astype(jnp.int32).reshape(N, 1)
    counts = jax.ops.segment_sum(jnp.ones((N, 1), jnp.float32),
                                 node2graph, num_segments=G)       # [G, 1] f32

    if tile_n is None:
        # TODO(synk): tune per generation (v5e/v6e can take ~2x the v7x tile).
        tile_n = 512
    tile_n = max(8, min(tile_n, _round_up(N, 8)))
    tile_n = _round_up(tile_n, 8)
    n_pad = _round_up(N, tile_n)
    if n_pad != N:
        x_bf = jnp.pad(x_bf, ((0, n_pad - N), (0, 0)))
        # sentinel 2*G matches neither the pos range [0, G) nor (seg+G) in
        # [0, 2G) -> padded rows contribute nothing to sums or the loss.
        seg = jnp.pad(seg, ((0, n_pad - N), (0, 0)), constant_values=2 * G)
    num_tiles = n_pad // tile_n

    w1g = params["w1g"].astype(jnp.bfloat16)
    w2g = params["w2g"].astype(jnp.bfloat16)
    b1g = params["b1g"].astype(jnp.float32)
    b2g = params["b2g"].astype(jnp.float32)

    kernel = functools.partial(infograph_kernel, inv_n=1.0 / float(N))

    out = pl.pallas_call(
        kernel,
        out_shape=jax.ShapeDtypeStruct((1, 1), jnp.float32),
        grid_spec=pltpu.PrefetchScalarGridSpec(
            num_scalar_prefetch=0,
            grid=(2, num_tiles),                      # (phase, N-tile)
            in_specs=[
                pl.BlockSpec((tile_n, 1), lambda p, t: (t, 0)),   # node->graph ids
                pl.BlockSpec((tile_n, H), lambda p, t: (t, 0)),   # x
                pl.BlockSpec((G, 1), lambda p, t: (0, 0)),        # counts
                pl.BlockSpec((H, H), lambda p, t: (0, 0)),        # w1g
                pl.BlockSpec((1, H), lambda p, t: (0, 0)),        # b1g
                pl.BlockSpec((H, H), lambda p, t: (0, 0)),        # w2g
                pl.BlockSpec((1, H), lambda p, t: (0, 0)),        # b2g
            ],
            out_specs=pl.BlockSpec((1, 1), lambda p, t: (0, 0)),
            scratch_shapes=[
                pltpu.VMEM((G, H), jnp.float32),       # per-graph feature sums
                pltpu.VMEM((H, 2 * G), jnp.bfloat16),  # [proj^T | rolled proj^T]
                pltpu.VMEM((1, 1), jnp.float32),       # loss accumulator
            ]),
        compiler_params=pltpu.CompilerParams(
            # both axes carry cross-iteration state (phase ordering, accumulators)
            dimension_semantics=("arbitrary", "arbitrary")),
    )(seg, x_bf, counts, w1g, b1g, w2g, b2g)
    return out[0, 0]


# ---------------------------------------------------------------------------
# Parameter init (mirrors nn.Linear shapes: two H->H layers per decoder).
# node_dec params are kept for module fidelity but are NOT used: the reference
# forward discards node_dec(node_rep), so it contributes nothing to the loss.
# ---------------------------------------------------------------------------
def init_params(key, hidden_dim):
    ks = jax.random.split(key, 8)
    s = 1.0 / jnp.sqrt(hidden_dim)

    def lin(kw, kb):
        w = jax.random.uniform(kw, (hidden_dim, hidden_dim), jnp.float32, -s, s)
        b = jax.random.uniform(kb, (1, hidden_dim), jnp.float32, -s, s)
        return w, b

    w1n, b1n = lin(ks[0], ks[1])
    w2n, b2n = lin(ks[2], ks[3])
    w1g, b1g = lin(ks[4], ks[5])
    w2g, b2g = lin(ks[6], ks[7])
    return dict(w1n=w1n, b1n=b1n, w2n=w2n, b2n=b2n,
                w1g=w1g, b1g=b1g, w2g=w2g, b2g=b2g)


# TODO(synk): `rep_model` is an injected external module (an equivariant GNN).
# It has no definition inside InfoGraph, so it is stubbed here with a single
# Linear + SiLU on node features; pos / edge_index / edge_attr are accepted but
# unused, and pred_pos is passed through (the reference forward ignores it).
def rep_model_stub(node_feature, pos, edge_index, edge_attr, w_rep, b_rep):
    pred_fea = _silu(node_feature @ w_rep + b_rep)
    pred_pos = pos
    return pred_fea, pred_pos


def gen_edge_onehot(edge_type, edge_types):
    if not edge_types:
        return None
    return jax.nn.one_hot(edge_type, edge_types, dtype=jnp.float32)


# ---------------------------------------------------------------------------
# Pure-JAX f32 reference of the same math, for a correctness check.
# ---------------------------------------------------------------------------
def ref_infograph_loss(node_rep, node2graph, num_graphs, params):
    x = node_rep.astype(jnp.float32)
    counts = jax.ops.segment_sum(jnp.ones((x.shape[0], 1), jnp.float32),
                                 node2graph, num_segments=num_graphs)
    graph_rep = jax.ops.segment_sum(x, node2graph, num_segments=num_graphs)
    graph_rep = graph_rep / jnp.maximum(counts, 1.0)

    g = jax.nn.silu(graph_rep @ params["w1g"] + params["b1g"])
    graph_rep_proj = g @ params["w2g"] + params["b2g"]

    neg_index = jnp.concatenate([jnp.arange(1, num_graphs), jnp.arange(1)])
    pos_graph = graph_rep_proj[node2graph]
    neg_graph = graph_rep_proj[neg_index][node2graph]
    pos_score = jnp.sum(pos_graph * x, axis=-1)
    neg_score = jnp.sum(neg_graph * x, axis=-1)
    return (jnp.mean(jax.nn.softplus(-pos_score))
            + jnp.mean(jax.nn.softplus(neg_score)))


if __name__ == "__main__":
    # Small, deterministic synthetic "batched graph".
    N, H, G, F_DIM, E = 40, 32, 4, 32, 64     # nodes, hidden, graphs, feat, edges
    ORDER = 2
    EDGE_TYPES = ORDER + 1                     # config.model.order + 1

    key = jax.random.PRNGKey(0)
    k_feat, k_pos, k_ei, k_et, k_rep, k_par = jax.random.split(key, 6)

    node_feature = jax.random.normal(k_feat, (N, F_DIM), jnp.float32)
    pos = jax.random.normal(k_pos, (N, 3), jnp.float32)
    edge_index = jax.random.randint(k_ei, (2, E), 0, N)
    edge_type = jax.random.randint(k_et, (E,), 0, EDGE_TYPES)
    node2graph = jnp.repeat(jnp.arange(G, dtype=jnp.int32), N // G)   # data.batch

    params = init_params(k_par, H)
    w_rep = jax.random.normal(k_rep, (F_DIM, H), jnp.float32) / jnp.sqrt(F_DIM)
    b_rep = jnp.zeros((1, H), jnp.float32)

    # forward(): edge one-hot -> rep_model -> InfoGraph score/loss (Pallas kernel)
    edge_attr = gen_edge_onehot(edge_type, EDGE_TYPES)
    pred_fea, pred_pos = rep_model_stub(node_feature, pos, edge_index,
                                        edge_attr, w_rep, b_rep)

    # tile_n=16 with N=40 exercises multiple N-tiles plus zero-padding/masking.
    loss = infograph_loss(pred_fea, node2graph, G, params, tile_n=16)
    loss = jax.block_until_ready(loss)

    ref = ref_infograph_loss(pred_fea, node2graph, G, params)
    assert jnp.isfinite(loss), "kernel produced non-finite loss"
    assert jnp.allclose(loss, ref, rtol=5e-2, atol=5e-2), (loss, ref)

    print("KERNEL_OK")
</pallas_src>

<mosaic_0001>
module attributes {stable_mosaic.version = 11 : i64} {
  func.func @infograph_kernel(%arg0: i32, %arg1: i32, %arg2: memref<16x1xi32, #tpu.memory_space<vmem>>, %arg3: memref<16x32xbf16, #tpu.memory_space<vmem>>, %arg4: memref<4x1xf32, #tpu.memory_space<vmem>>, %arg5: memref<32x32xbf16, #tpu.memory_space<vmem>>, %arg6: memref<1x32xf32, #tpu.memory_space<vmem>>, %arg7: memref<32x32xbf16, #tpu.memory_space<vmem>>, %arg8: memref<1x32xf32, #tpu.memory_space<vmem>>, %arg9: memref<1x1xf32, #tpu.memory_space<vmem>>, %arg10: memref<4x32xf32, #tpu.memory_space<vmem>>, %arg11: memref<32x8xbf16, #tpu.memory_space<vmem>>, %arg12: memref<1x1xf32, #tpu.memory_space<vmem>>) attributes {dimension_semantics = [#tpu.dimension_semantics<arbitrary>, #tpu.dimension_semantics<arbitrary>], iteration_bounds = array<i64: 2, 3>, scalar_prefetch = 0 : i64, scratch_operands = 3 : i64, tpu.core_type = #tpu.core_type<tc>, window_params = [{transform_indices = @transform_0, window_bounds = array<i64: 16, 1>}, {transform_indices = @transform_1, window_bounds = array<i64: 16, 32>}, {pipeline_mode = #tpu.pipeline_mode<synchronous>, transform_indices = @transform_2, window_bounds = array<i64: 4, 1>}, {pipeline_mode = #tpu.pipeline_mode<synchronous>, transform_indices = @transform_3, window_bounds = array<i64: 32, 32>}, {pipeline_mode = #tpu.pipeline_mode<synchronous>, transform_indices = @transform_4, window_bounds = array<i64: 1, 32>}, {pipeline_mode = #tpu.pipeline_mode<synchronous>, transform_indices = @transform_5, window_bounds = array<i64: 32, 32>}, {pipeline_mode = #tpu.pipeline_mode<synchronous>, transform_indices = @transform_6, window_bounds = array<i64: 1, 32>}, {pipeline_mode = #tpu.pipeline_mode<synchronous>, transform_indices = @transform_7, window_bounds = array<i64: 1, 1>}]} {
    %c0_i32 = arith.constant 0 : i32
    %0 = arith.cmpi eq, %arg0, %c0_i32 : i32
    %c0_i32_0 = arith.constant 0 : i32
    %1 = arith.cmpi eq, %arg1, %c0_i32_0 : i32
    %2 = arith.andi %0, %1 : i1
    %3 = arith.extui %2 : i1 to i32
    %c0_i32_1 = arith.constant 0 : i32
    %4 = arith.cmpi ne, %3, %c0_i32_1 : i32
    scf.if %4 {
      %cst = arith.constant 0.000000e+00 : f32
      %21 = vector.broadcast %cst : f32 to vector<4x32xf32>
      %c0 = arith.constant 0 : index
      %c0_10 = arith.constant 0 : index
      %22 = vector.load %arg10[%c0, %c0_10] : memref<4x32xf32, #tpu.memory_space<vmem>>, vector<4x32xf32>
      tpu.vector_store %arg10[%c0, %c0_10], %21 {strides = array<i32>} : memref<4x32xf32, #tpu.memory_space<vmem>>, vector<4x32xf32>,
      %cst_11 = arith.constant 0.000000e+00 : f32
      %23 = vector.broadcast %cst_11 : f32 to vector<1x1xf32>
      %c0_12 = arith.constant 0 : index
      %c0_13 = arith.constant 0 : index
      %24 = vector.load %arg12[%c0_12, %c0_13] : memref<1x1xf32, #tpu.memory_space<vmem>>, vector<1x1xf32>
      tpu.vector_store %arg12[%c0_12, %c0_13], %23 {strides = array<i32>} : memref<1x1xf32, #tpu.memory_space<vmem>>, vector<1x1xf32>,
    } else {
    }
    %c0_i32_2 = arith.constant 0 : i32
    %5 = arith.cmpi eq, %arg0, %c0_i32_2 : i32
    %6 = arith.extui %5 : i1 to i32
    %c0_i32_3 = arith.constant 0 : i32
    %7 = arith.cmpi ne, %6, %c0_i32_3 : i32
    scf.if %7 {
      %c0 = arith.constant 0 : index
      %c0_10 = arith.constant 0 : index
      %21 = vector.load %arg2[%c0, %c0_10] : memref<16x1xi32, #tpu.memory_space<vmem>>, vector<16x1xi32>
      %22 = tpu.iota {dimensions = array<i32: 1>} : vector<16x4xi32>
      %23 = vector.broadcast %21 : vector<16x1xi32> to vector<16x4xi32>
      %24 = arith.cmpi eq, %22, %23 : vector<16x4xi32>
      %25 = arith.extui %24 : vector<16x4xi1> to vector<16x4xi32>
      %26 = arith.sitofp %25 : vector<16x4xi32> to vector<16x4xf32>
      %27 = arith.truncf %26 : vector<16x4xf32> to vector<16x4xbf16>
      %c0_11 = arith.constant 0 : index
      %c0_12 = arith.constant 0 : index
      %28 = vector.load %arg10[%c0_11, %c0_12] : memref<4x32xf32, #tpu.memory_space<vmem>>, vector<4x32xf32>
      %c0_13 = arith.constant 0 : index
      %c0_14 = arith.constant 0 : index
      %29 = vector.load %arg3[%c0_13, %c0_14] : memref<16x32xbf16, #tpu.memory_space<vmem>>, vector<16x32xbf16>
      %cst = arith.constant dense<0.000000e+00> : vector<4x32xf32>
      %30 = tpu.matmul %27, %29, %cst {dimension_numbers = #tpu.dot_dimension_numbers<[0], [0], [1], [1], [0, 1, 1, 1], [], []>} : vector<16x4xbf16>, vector<16x32xbf16>, vector<4x32xf32> -> vector<4x32xf32>
      %31 = arith.addf %28, %30 : vector<4x32xf32>
      %c0_15 = arith.constant 0 : index
      %c0_16 = arith.constant 0 : index
      %32 = vector.load %arg10[%c0_15, %c0_16] : memref<4x32xf32, #tpu.memory_space<vmem>>, vector<4x32xf32>
      tpu.vector_store %arg10[%c0_15, %c0_16], %31 {strides = array<i32>} : memref<4x32xf32, #tpu.memory_space<vmem>>, vector<4x32xf32>,
    } else {
    }
    %c0_i32_4 = arith.constant 0 : i32
    %8 = arith.cmpi eq, %arg0, %c0_i32_4 : i32
    %c2_i32 = arith.constant 2 : i32
    %9 = arith.cmpi eq, %arg1, %c2_i32 : i32
    %10 = arith.andi %8, %9 : i1
    %11 = arith.extui %10 : i1 to i32
    %c0_i32_5 = arith.constant 0 : i32
    %12 = arith.cmpi ne, %11, %c0_i32_5 : i32
    scf.if %12 {
      %c0 = arith.constant 0 : index
      %c0_10 = arith.constant 0 : index
      %21 = vector.load %arg4[%c0, %c0_10] : memref<4x1xf32, #tpu.memory_space<vmem>>, vector<4x1xf32>
      %cst = arith.constant 1.000000e+00 : f32
      %22 = vector.broadcast %cst : f32 to vector<4x1xf32>
      %23 = arith.maximumf %21, %22 : vector<4x1xf32>
      %24 = tpu.reciprocal %23 {approx = true} : vector<4x1xf32> -> vector<4x1xf32>
      %c0_11 = arith.constant 0 : index
      %c0_12 = arith.constant 0 : index
      %25 = vector.load %arg10[%c0_11, %c0_12] : memref<4x32xf32, #tpu.memory_space<vmem>>, vector<4x32xf32>
      %26 = vector.broadcast %24 : vector<4x1xf32> to vector<4x32xf32>
      %27 = arith.mulf %25, %26 : vector<4x32xf32>
      %28 = arith.truncf %27 : vector<4x32xf32> to vector<4x32xbf16>
      %c0_13 = arith.constant 0 : index
      %c0_14 = arith.constant 0 : index
      %29 = vector.load %arg5[%c0_13, %c0_14] : memref<32x32xbf16, #tpu.memory_space<vmem>>, vector<32x32xbf16>
      %cst_15 = arith.constant dense<0.000000e+00> : vector<4x32xf32>
      %30 = tpu.matmul %28, %29, %cst_15 {dimension_numbers = #tpu.dot_dimension_numbers<[1], [0], [0], [1], [0, 0, 1, 1], [], []>} : vector<4x32xbf16>, vector<32x32xbf16>, vector<4x32xf32> -> vector<4x32xf32>
      %c0_16 = arith.constant 0 : index
      %c0_17 = arith.constant 0 : index
      %31 = vector.load %arg6[%c0_16, %c0_17] : memref<1x32xf32, #tpu.memory_space<vmem>>, vector<1x32xf32>
      %32 = vector.broadcast %31 : vector<1x32xf32> to vector<4x32xf32>
      %33 = arith.addf %30, %32 : vector<4x32xf32>
      %34 = arith.negf %33 : vector<4x32xf32>
      %35 = math.exp %34 : vector<4x32xf32>
      %cst_18 = arith.constant 1.000000e+00 : f32
      %36 = vector.broadcast %cst_18 : f32 to vector<4x32xf32>
      %37 = arith.addf %36, %35 : vector<4x32xf32>
      %38 = arith.divf %36, %37 : vector<4x32xf32>
      %39 = arith.mulf %33, %38 : vector<4x32xf32>
      %40 = arith.truncf %39 : vector<4x32xf32> to vector<4x32xbf16>
      %c0_19 = arith.constant 0 : index
      %c0_20 = arith.constant 0 : index
      %41 = vector.load %arg7[%c0_19, %c0_20] : memref<32x32xbf16, #tpu.memory_space<vmem>>, vector<32x32xbf16>
      %cst_21 = arith.constant dense<0.000000e+00> : vector<4x32xf32>
      %42 = tpu.matmul %40, %41, %cst_21 {dimension_numbers = #tpu.dot_dimension_numbers<[1], [0], [0], [1], [0, 0, 1, 1], [], []>} : vector<4x32xbf16>, vector<32x32xbf16>, vector<4x32xf32> -> vector<4x32xf32>
      %c0_22 = arith.constant 0 : index
      %c0_23 = arith.constant 0 : index
      %43 = vector.load %arg8[%c0_22, %c0_23] : memref<1x32xf32, #tpu.memory_space<vmem>>, vector<1x32xf32>
      %44 = vector.broadcast %43 : vector<1x32xf32> to vector<4x32xf32>
      %45 = arith.addf %42, %44 : vector<4x32xf32>
      %46 = vector.extract_strided_slice %45 {offsets = [1, 0], sizes = [3, 32], strides = [1, 1]} : vector<4x32xf32> to vector<3x32xf32>
      %47 = vector.extract_strided_slice %45 {offsets = [0, 0], sizes = [1, 32], strides = [1, 1]} : vector<4x32xf32> to vector<1x32xf32>
      %48 = tpu.concatenate %46, %47 in 0 : vector<3x32xf32>, vector<1x32xf32> -> vector<4x32xf32>
      %49 = tpu.concatenate %45, %48 in 0 : vector<4x32xf32>, vector<4x32xf32> -> vector<8x32xf32>
      %50 = tpu.transpose %49, [1, 0] : vector<8x32xf32> -> vector<32x8xf32>
      %51 = arith.truncf %50 : vector<32x8xf32> to vector<32x8xbf16>
      %c0_24 = arith.constant 0 : index
      %c0_25 = arith.constant 0 : index
      %52 = vector.load %arg11[%c0_24, %c0_25] : memref<32x8xbf16, #tpu.memory_space<vmem>>, vector<32x8xbf16>
      tpu.vector_store %arg11[%c0_24, %c0_25], %51 {strides = array<i32>} : memref<32x8xbf16, #tpu.memory_space<vmem>>, vector<32x8xbf16>,
    } else {
    }
    %c1_i32 = arith.constant 1 : i32
    %13 = arith.cmpi eq, %arg0, %c1_i32 : i32
    %14 = arith.extui %13 : i1 to i32
    %c0_i32_6 = arith.constant 0 : i32
    %15 = arith.cmpi ne, %14, %c0_i32_6 : i32
    scf.if %15 {
      %c0 = arith.constant 0 : index
      %c0_10 = arith.constant 0 : index
      %21 = vector.load %arg3[%c0, %c0_10] : memref<16x32xbf16, #tpu.memory_space<vmem>>, vector<16x32xbf16>
      %c0_11 = arith.constant 0 : index
      %c0_12 = arith.constant 0 : index
      %22 = vector.load %arg2[%c0_11, %c0_12] : memref<16x1xi32, #tpu.memory_space<vmem>>, vector<16x1xi32>
      %c0_13 = arith.constant 0 : index
      %c0_14 = arith.constant 0 : index
      %23 = vector.load %arg11[%c0_13, %c0_14] : memref<32x8xbf16, #tpu.memory_space<vmem>>, vector<32x8xbf16>
      %cst = arith.constant dense<0.000000e+00> : vector<16x8xf32>
      %24 = tpu.matmul %21, %23, %cst {dimension_numbers = #tpu.dot_dimension_numbers<[1], [0], [0], [1], [0, 0, 1, 1], [], []>} : vector<16x32xbf16>, vector<32x8xbf16>, vector<16x8xf32> -> vector<16x8xf32>
      %25 = tpu.iota {dimensions = array<i32: 1>} : vector<16x8xi32>
      %26 = vector.broadcast %22 : vector<16x1xi32> to vector<16x8xi32>
      %27 = arith.cmpi eq, %25, %26 : vector<16x8xi32>
      %28 = arith.extui %27 : vector<16x8xi1> to vector<16x8xi32>
      %29 = arith.sitofp %28 : vector<16x8xi32> to vector<16x8xf32>
      %c4_i32 = arith.constant 4 : i32
      %30 = vector.broadcast %c4_i32 : i32 to vector<16x1xi32>
      %31 = arith.addi %22, %30 : vector<16x1xi32>
      %32 = vector.broadcast %31 : vector<16x1xi32> to vector<16x8xi32>
      %33 = arith.cmpi eq, %25, %32 : vector<16x8xi32>
      %34 = arith.extui %33 : vector<16x8xi1> to vector<16x8xi32>
      %35 = arith.sitofp %34 : vector<16x8xi32> to vector<16x8xf32>
      %36 = arith.mulf %24, %29 : vector<16x8xf32>
      %cst_15 = arith.constant dense<0.000000e+00> : vector<16xf32>
      %37 = vector.multi_reduction <add>, %36, %cst_15 [1] : vector<16x8xf32> to vector<16xf32>
      %38 = vector.shape_cast %37 : vector<16xf32> to vector<16x1xf32>
      %39 = arith.mulf %24, %35 : vector<16x8xf32>
      %cst_16 = arith.constant dense<0.000000e+00> : vector<16xf32>
      %40 = vector.multi_reduction <add>, %39, %cst_16 [1] : vector<16x8xf32> to vector<16xf32>
      %41 = vector.shape_cast %40 : vector<16xf32> to vector<16x1xf32>
      %c4_i32_17 = arith.constant 4 : i32
      %42 = vector.broadcast %c4_i32_17 : i32 to vector<16x1xi32>
      %43 = arith.cmpi slt, %22, %42 : vector<16x1xi32>
      %44 = arith.extui %43 : vector<16x1xi1> to vector<16x1xi32>
      %45 = arith.sitofp %44 : vector<16x1xi32> to vector<16x1xf32>
      %cst_18 = arith.constant 0.000000e+00 : f32
      %46 = vector.broadcast %cst_18 : f32 to vector<16x1xf32>
      %47 = arith.subf %46, %38 : vector<16x1xf32>
      %cst_19 = arith.constant 0.000000e+00 : f32
      %48 = vector.broadcast %cst_19 : f32 to vector<16x1xf32>
      %49 = arith.maximumf %47, %48 : vector<16x1xf32>
      %50 = math.absf %47 : vector<16x1xf32>
      %cst_20 = arith.constant 0.000000e+00 : f32
      %51 = vector.broadcast %cst_20 : f32 to vector<16x1xf32>
      %52 = arith.subf %51, %50 : vector<16x1xf32>
      %53 = math.exp %52 : vector<16x1xf32>
      %cst_21 = arith.constant 1.000000e+00 : f32
      %54 = vector.broadcast %cst_21 : f32 to vector<16x1xf32>
      %55 = arith.addf %54, %53 : vector<16x1xf32>
      %56 = math.log %55 : vector<16x1xf32>
      %57 = arith.addf %49, %56 : vector<16x1xf32>
      %cst_22 = arith.constant 0.000000e+00 : f32
      %58 = vector.broadcast %cst_22 : f32 to vector<16x1xf32>
      %59 = arith.maximumf %41, %58 : vector<16x1xf32>
      %60 = math.absf %41 : vector<16x1xf32>
      %cst_23 = arith.constant 0.000000e+00 : f32
      %61 = vector.broadcast %cst_23 : f32 to vector<16x1xf32>
      %62 = arith.subf %61, %60 : vector<16x1xf32>
      %63 = math.exp %62 : vector<16x1xf32>
      %cst_24 = arith.constant 1.000000e+00 : f32
      %64 = vector.broadcast %cst_24 : f32 to vector<16x1xf32>
      %65 = arith.addf %64, %63 : vector<16x1xf32>
      %66 = math.log %65 : vector<16x1xf32>
      %67 = arith.addf %59, %66 : vector<16x1xf32>
      %68 = arith.addf %57, %67 : vector<16x1xf32>
      %69 = arith.mulf %68, %45 : vector<16x1xf32>
      %c0_25 = arith.constant 0 : index
      %c0_26 = arith.constant 0 : index
      %70 = vector.load %arg12[%c0_25, %c0_26] : memref<1x1xf32, #tpu.memory_space<vmem>>, vector<1x1xf32>
      %cst_27 = arith.constant dense<0.000000e+00> : vector<1xf32>
      %71 = vector.multi_reduction <add>, %69, %cst_27 [0] : vector<16x1xf32> to vector<1xf32>
      %72 = vector.shape_cast %71 : vector<1xf32> to vector<1x1xf32>
      %73 = arith.addf %70, %72 : vector<1x1xf32>
      %c0_28 = arith.constant 0 : index
      %c0_29 = arith.constant 0 : index
      %74 = vector.load %arg12[%c0_28, %c0_29] : memref<1x1xf32, #tpu.memory_space<vmem>>, vector<1x1xf32>
      tpu.vector_store %arg12[%c0_28, %c0_29], %73 {strides = array<i32>} : memref<1x1xf32, #tpu.memory_space<vmem>>, vector<1x1xf32>,
    } else {
    }
    %c1_i32_7 = arith.constant 1 : i32
    %16 = arith.cmpi eq, %arg0, %c1_i32_7 : i32
    %c2_i32_8 = arith.constant 2 : i32
    %17 = arith.cmpi eq, %arg1, %c2_i32_8 : i32
    %18 = arith.andi %16, %17 : i1
    %19 = arith.extui %18 : i1 to i32
    %c0_i32_9 = arith.constant 0 : i32
    %20 = arith.cmpi ne, %19, %c0_i32_9 : i32
    scf.if %20 {
      %c0 = arith.constant 0 : index
      %c0_10 = arith.constant 0 : index
      %21 = vector.load %arg12[%c0, %c0_10] : memref<1x1xf32, #tpu.memory_space<vmem>>, vector<1x1xf32>
      %cst = arith.constant 2.500000e-02 : f32
      %22 = vector.broadcast %cst : f32 to vector<1x1xf32>
      %23 = arith.mulf %21, %22 : vector<1x1xf32>
      %c0_11 = arith.constant 0 : index
      %c0_12 = arith.constant 0 : index
      %24 = vector.load %arg9[%c0_11, %c0_12] : memref<1x1xf32, #tpu.memory_space<vmem>>, vector<1x1xf32>
      tpu.vector_store %arg9[%c0_11, %c0_12], %23 {strides = array<i32>} : memref<1x1xf32, #tpu.memory_space<vmem>>, vector<1x1xf32>,
    } else {
    }
    return
  }
  func.func @transform_0(%arg0: i32, %arg1: i32) -> (i32, i32) {
    %c0_i32 = arith.constant 0 : i32
    %c0_i32_0 = arith.constant 0 : i32
    return %arg1, %c0_i32 : i32, i32
  }
  func.func @transform_1(%arg0: i32, %arg1: i32) -> (i32, i32) {
    %c0_i32 = arith.constant 0 : i32
    %c0_i32_0 = arith.constant 0 : i32
    return %arg1, %c0_i32 : i32, i32
  }
  func.func @transform_2(%arg0: i32, %arg1: i32) -> (i32, i32) {
    %c0_i32 = arith.constant 0 : i32
    %c0_i32_0 = arith.constant 0 : i32
    %c0_i32_1 = arith.constant 0 : i32
    return %c0_i32, %c0_i32_0 : i32, i32
  }
  func.func @transform_3(%arg0: i32, %arg1: i32) -> (i32, i32) {
    %c0_i32 = arith.constant 0 : i32
    %c0_i32_0 = arith.constant 0 : i32
    %c0_i32_1 = arith.constant 0 : i32
    return %c0_i32, %c0_i32_0 : i32, i32
  }
  func.func @transform_4(%arg0: i32, %arg1: i32) -> (i32, i32) {
    %c0_i32 = arith.constant 0 : i32
    %c0_i32_0 = arith.constant 0 : i32
    %c0_i32_1 = arith.constant 0 : i32
    return %c0_i32, %c0_i32_0 : i32, i32
  }
  func.func @transform_5(%arg0: i32, %arg1: i32) -> (i32, i32) {
    %c0_i32 = arith.constant 0 : i32
    %c0_i32_0 = arith.constant 0 : i32
    %c0_i32_1 = arith.constant 0 : i32
    return %c0_i32, %c0_i32_0 : i32, i32
  }
  func.func @transform_6(%arg0: i32, %arg1: i32) -> (i32, i32) {
    %c0_i32 = arith.constant 0 : i32
    %c0_i32_0 = arith.constant 0 : i32
    %c0_i32_1 = arith.constant 0 : i32
    return %c0_i32, %c0_i32_0 : i32, i32
  }
  func.func @transform_7(%arg0: i32, %arg1: i32) -> (i32, i32) {
    %c0_i32 = arith.constant 0 : i32
    %c0_i32_0 = arith.constant 0 : i32
    %c0_i32_1 = arith.constant 0 : i32
    return %c0_i32, %c0_i32_0 : i32, i32
  }
}

</mosaic_0001>

<bundles_post_ra>
// kernel: tpu_custom_call.1
= control target key start
LH: loop header
LB: loop body
LE: loop exit
PB: predicated region body
PF: predicated region fallthrough
CT: control target
= control target key end

     0   :  { %12 = vsyncpa [#allocation6], 0  ;;  %s1181_s24 = smov 0   ;;  %s1183_s25 = smov 0   ;;  %s1327_s0 = inlined_call_operand.vmem [shape: s32[48,1], index: 0, kind: input, shape index: {}]   ;;  %s1328_s1 = inlined_call_operand.vmem [shape: bf16[48,32], index: 1, kind: input, shape index: {}]   ;;  %s1329_s2 = inlined_call_operand.vmem [shape: f32[4,1], index: 2, kind: input, shape index: {}]   ;;  %s1330_s3 = inlined_call_operand.vmem [shape: bf16[32,32], index: 3, kind: input, shape index: {}]   ;;  %s1331_s4 = inlined_call_operand.vmem [shape: f32[1,32], index: 4, kind: input, shape index: {}]   ;;  %s1332_s5 = inlined_call_operand.vmem [shape: bf16[32,32], index: 5, kind: input, shape index: {}]   ;;  %s1333_s6 = inlined_call_operand.vmem [shape: f32[1,32], index: 6, kind: input, shape index: {}]   ;;  %s1334_s7 = inlined_call_operand.hbm [shape: f32[1,1], index: 7, kind: output, shape index: {}]  }
   0x1   :  { %s1185_s26 = smov 0   ;;  %s1187_s27 = smov 0  }
   0x2   :  { %s1189_s28 = smov 0  }
   0x3 LB: > { %s885_s29 = sadd.s32 4294967295, %s1128_s28   ;;  %s27_s30 = sadd.s32 1, %s1120_s26  ;;  %s1128_s28 = sphi %s1189_s28, %s18_s28   ;;  %s1124_s27 = sphi %s1187_s27, %s1339_s27   ;;  %s1120_s26 = sphi %s1185_s26, %s1338_s26   ;;  %s1116_s25 = sphi %s1183_s25, %s1337_s25   ;;  %s1112_s24 = sphi %s1181_s24, %s1336_s24  }
   0x4   : > { %p28_p0 = scmp.ge.s32.totalorder %s27_s30, 3  ;;  %s30_s8 = sadd.s32 1, %s1124_s27 }
   0x5   : > { %p888_p1 = scmp.ge.s32.totalorder %s1128_s28, 1  ;;  %p257_p2 = scmp.lt.s32.totalorder %s1128_s28, 7 }
   0x6   : > { %s1341_s30 = smov (%p28_p0, %s27_s30), 0  ;;  %s1343_s8 = smov (!%p28_p0, %s30_s8), %s1124_s27 }
   0x7   : > { %p258_p3 = pnand %p888_p1, %p257_p2  ;;  %p32_p4 = scmp.ge.s32.totalorder %s1343_s8, 2 }
   0x8   : > { %s889_s9 = sshll.u32 (!%p258_p3), %s1112_s24, 1  ;;  %p302_p5 = scmp.eq.s32.totalorder (!%p258_p3), %s1116_s25, 0 }
   0x9   : > { %s1345_s8 = smov (%p32_p4, %s1343_s8), 0  ;;  %261 = sbr.rel (%p258_p3) target bundleno = 1633 (0x661), region = 48 }
   0xa   : > { %p290_p6 = scmp.lt.s32.totalorder (!%p258_p3), %s889_s9, 5  ;;  %p303_p7 = scmp.eq.s32.totalorder (!%p258_p3), %s1112_s24, 0 }
   0xc   : > { %p304_p8 = pnand (!%p258_p3), %p303_p7, %p302_p5 }
   0xe   : > { %s1347_s9 = smov (!%p290_p6, %s889_s9), 5  ;;  %307 = sbr.rel (%p304_p8) target bundleno = 22 (0x16), region = 52 }
   0xf   : > { %s890_s10 = sshll.u32 %s1347_s9, 3  ;;  %s892_s11 = sshll.u32 %s1347_s9, 2 }
  0x10   : > { %s1224_s14 = scalar_lea.vmem %s1327_s0, %s890_s10  ;;  %s1229_s17 = scalar_lea.vmem %s1328_s1, %s892_s11 }
  0x13   : > { %vm308_vm0 = vcmask 257024   ;;  %vm310_vm1 = vcmask 0   ;;  %v1130_v0 = vmov 0.0  }
  0x14   : > { %309 = vst.msk [vmem:[#allocation2] sm:$0xf] %vm308_vm0, %v1130_v0 }
  0x15   : > { %311 = vst.msk [vmem:[#allocation4] sm:$0x1] %vm310_vm1, %v1130_v0 }
  0x16 PF: > { %p893_p9 = scmp.ne.s32.totalorder %s1116_s25, 0 }
  0x18   : > { %314 = sbr.rel (%p893_p9) target bundleno = 461 (0x1cd), region = 56 }
  0x1d   : > { %v315_v1 = vld [vmem:[%s1224_s14] sm:$0xff]  ;;  %v1131_v2 = vmov 0   ;;  %v1132_v3 = vmov 0.0   ;;  %v316_v4 = vld [vmem:[%s1224_s14 + $0x8] sm:$0xff]  ;;  %vm1133_vm2 = vmmov 0   ;;  %v317_v6 = vlaneseq }
  0x1e   : > { %1028 = vset.pattern.permute.xlu0 %v1131_v2  ;;  %941 = vmatprep.subr.bf16.mxu0 %v1132_v3  ;;  %v1029_v5 = vld [vmem:[%s1229_s17] sm:$0xff]   ;;  %vm357_vm5 = vcmask 130048   ;;  %vm402_vm6 = vcmask 257024  }
  0x1f   : > { %320 = vperm.xlu0 %1028, %v315_v1   ;;  %943 = vmatprep.mubr.msk.bf16.mxu0 %vm1133_vm2, %v1132_v3  ;;  %v318_v7 = vand.u32 127, %v317_v6  ;;  %v332_v14 = vld [vmem:[#allocation2] sm:$0xf] }
  0x20   : > { %942 = vmatpush3.bf16.msra.mxu0 %v1029_v5 }
  0x23   : > { %323 = vperm.xlu0 %1028, %v316_v4  }
  0x9a   : > { %v321_v8 = vpop.permute.xlu0 %320 }
  0x9b   : > { %vm325_vm3 = vcmp.eq.s32.totalorder %v318_v7, %v321_v8 }
  0x9c   : > { %v894_v10 = vsel %vm325_vm3, 1.0, %v1132_v3 }
  0x9e   : > { %v324_v9 = vpop.permute.xlu0 %323 }
  0x9f   : > { %vm326_vm4 = vcmp.eq.s32.totalorder %v318_v7, %v324_v9 }
  0xa0   : > { %v895_v11 = vsel %vm326_vm4, 1.0, %v1132_v3 }
  0xa1   : > { %v331_v12 = vpack.c.bf16 %v895_v11, %v894_v10 }
  0xa3   : > { %335 = vxpose.xlu1.c.b16.start.end [1/1] (short) (narrow) %v331_v12, 16 }
 0x105   : > { %v343_v13 = vpop.trf.xlu1 }
 0x106   : > { %944 = vmatmul.mubr.msk.bf16.vlgmr.msra.gmra.mxu0 %vm357_vm5, %v343_v13 }
 0x1c6   : > { %v395_v15 = vpop.f32.mrf.mxu0 }
 0x1c7   : > { %v401_v16 = vadd.f32 %v395_v15, %v332_v14 }
 0x1c8   : > { %v945_v17 = vpop.f32.mrf.mxu0 }
 0x1c9   : > { %403 = vst.msk [vmem:[#allocation2] sm:$0xf] %vm402_vm6, %v401_v16 }
 0x1ca   : > { %v398_v18 = vpop.f32.mrf.mxu0 }
 0x1cc   : > { %v946_v19 = vpop.f32.mrf.mxu0 }
 0x1cd PF: > { %p404_p10 = scmp.eq.s32.totalorder %s1112_s24, 2 }
 0x1cf   : > { %p405_p11 = pnand %p404_p10, %p302_p5 }
 0x1d1   : > { %408 = sbr.rel (%p405_p11) target bundleno = 1187 (0x4a3), region = 60 }
 0x1d6   : > { %v409_v20 = vld [vmem:[%s1329_s2] sm:$0xf]  ;;  %v1134_v21 = vmov 0   ;;  %v1135_v23 = vmov 0.0   ;;  %v1031_v24 = vld [vmem:[%s1330_s3 + $0x8] sm:$0xff]   ;;  %vm1136_vm7 = vmmov 0  }
 0x1d7   : > { %1030 = vset.pattern.permute.xlu0 %v1134_v21  ;;  %v410_v22 = vmax.f32 %v409_v20, 1.0  ;;  %947 = vmatprep.subr.bf16.mxu0 %v1135_v23  ;;  %v1032_v25 = vld [vmem:[%s1330_s3] sm:$0xff]   ;;  %vm443_vm8 = vcmask 261120   ;;  %v1033_v31 = vld [vmem:[%s1332_s5 + $0x8] sm:$0xff]   ;;  %vm566_vm9 = vcmask 1042432   ;;  %vm571_vm10 = vcmask 1043456  }
 0x1d8   : > { %955 = vmatprep.subr.bf16.mxu1 %v1135_v23  ;;  %948 = vmatpush3.bf16.msra.mxu0 %v1031_v24  ;;  %v412_v27 = vld [vmem:[#allocation2] sm:$0xf]  ;;  %vm621_vm11 = vcmask 60416  }
 0x1d9   : > { %1035 = vrcp.f32 %v410_v22  ;;  %949 = vmatprep.subr.bf16.mxu0 %v1135_v23  ;;  %951 = vmatprep.mubr.msk.bf16.mxu0 %vm1136_vm7, %v1135_v23  ;;  %v1034_v32 = vld [vmem:[%s1332_s5] sm:$0xff]  }
 0x1da   : > { %959 = vmatprep.mubr.msk.bf16.mxu1 %vm1136_vm7, %v1135_v23  ;;  %956 = vmatpush3.bf16.msra.mxu1 %v1033_v31  ;;  %v898_v33 = vld [vmem:[%s1331_s4] ss:$0 sm:$0xff] }
 0x1db   : > { %957 = vmatprep.subr.bf16.mxu1 %v1135_v23  ;;  %v903_v45 = vld [vmem:[%s1333_s6] ss:$0 sm:$0xff] }
 0x1dc   : > { %950 = vmatpush3.bf16.msra.mxu0 %v1032_v25 }
 0x1de   : > { %958 = vmatpush3.bf16.msra.mxu1 %v1034_v32 }
 0x1e6   : > { %v1036_v26 = vpop.eup %1035 }
 0x1e7   : > { %415 = vperm.xlu0 %1030, %v1036_v26  }
 0x262   : > { %v416_v28 = vpop.permute.xlu0 %415 }
 0x263   : > { %v418_v29 = vmul.f32 %v416_v28, %v412_v27 }
 0x265   : > { %v419_v30 = vpack.c.bf16 %v418_v29, %v418_v29 }
 0x267   : > { %952 = vmatmul.mubr.msk.bf16.vlgmr.msra.gmra.mxu0 %vm443_vm8, %v419_v30 }
 0x327   : > { %v481_v34 = vpop.f32.mrf.mxu0 }
 0x328   : > { %v482_v35 = vadd.f32 %v898_v33, %v481_v34 }
 0x329   : > { %v953_v36 = vpop.f32.mrf.mxu0 }
 0x32a   : > { %v902_v37 = vmul.f32 -1.442695, %v482_v35 }
 0x32b   : > { %v484_v38 = vpop.f32.mrf.mxu0 }
 0x32c   : > { %1037 = vpow2.f32 %v902_v37 }
 0x32d   : > { %v954_v39 = vpop.f32.mrf.mxu0 }
 0x339   : > { %v1038_v40 = vpop.eup %1037 }
 0x33a   : > { %v490_v41 = vadd.f32 1.0, %v1038_v40 }
 0x33c   : > { %1039 = vrcp.f32 %v490_v41 }
 0x349   : > { %v1040_v42 = vpop.eup %1039 }
 0x34a   : > { %v493_v43 = vmul.f32 %v1040_v42, %v482_v35 }
 0x34c   : > { %v494_v44 = vpack.c.bf16 %v493_v43, %v493_v43 }
 0x34e   : > { %960 = vmatmul.mubr.msk.bf16.vlgmr.msra.gmra.mxu1 %vm443_vm8, %v494_v44 }
 0x40e   : > { %v555_v46 = vpop.f32.mrf.mxu1 }
 0x40f   : > { %v556_v47 = vadd.f32 %v903_v45, %v555_v46 }
 0x410   : > { %v961_v48 = vpop.f32.mrf.mxu1 }
 0x411   : > { %v562_v49 = vrot.slane %v556_v47, 1  ;;  %v564_v50 = vrot.slane %v556_v47, 5 }
 0x412   : > { %v558_v51 = vpop.f32.mrf.mxu1 }
 0x413   : > { %v567_v52 = vsel %vm566_vm9, %v562_v49, %v564_v50 }
 0x414   : > { %v962_v53 = vpop.f32.mrf.mxu1  ;;  %v569_v54 = vrot.slane %v567_v52, 4 }
 0x416   : > { %v572_v55 = vsel %vm571_vm10, %v556_v47, %v569_v54 }
 0x417   : > { %573 = vxpose.xlu0.b32.start.end [1/1] (short) (narrow) %v572_v55, 32 }
 0x493   : > { %v589_v56 = vpop.trf.xlu0 }
 0x494   : > { %v926_v57 = vpack.c.bf16 %v589_v56, %v589_v56 }
 0x496   : > { %622 = vst.msk [vmem:[#allocation3] sm:$0xf] %vm621_vm11, %v926_v57 }
 0x497   : > { %v590_v58 = vpop.trf.xlu0 }
 0x498   : > { %v927_v59 = vpack.c.bf16 %v590_v58, %v590_v58 }
 0x49a   : > { %623 = vst.msk [vmem:[#allocation3 + $0x4] sm:$0xf] %vm621_vm11, %v927_v59 }
 0x49b   : > { %v591_v60 = vpop.trf.xlu0 }
 0x49c   : > { %v928_v61 = vpack.c.bf16 %v591_v60, %v591_v60 }
 0x49e   : > { %624 = vst.msk [vmem:[#allocation3 + $0x8] sm:$0xf] %vm621_vm11, %v928_v61 }
 0x49f   : > { %v592_v62 = vpop.trf.xlu0 }
 0x4a0   : > { %v929_v63 = vpack.c.bf16 %v592_v62, %v592_v62 }
 0x4a2   : > { %625 = vst.msk [vmem:[#allocation3 + $0xc] sm:$0xf] %vm621_vm11, %v929_v63 }
 0x4a3 PF: > { %p626_p12 = scmp.eq.s32.totalorder %s1116_s25, 1  ;;  %p911_p13 = scmp.ne.s32.totalorder %s1116_s25, 1 }
 0x4a5   : > { %629 = sbr.rel (%p911_p13) target bundleno = 1607 (0x647), region = 64 }
 0x4aa   : > { %v1043_v0 = vld [vmem:[#allocation3 + $0x8] sm:$0xff]   ;;  %v1137_v1 = vmov 0.0   ;;  %v1044_v2 = vld [vmem:[#allocation3] sm:$0xff]   ;;  %vm1138_vm12 = vmmov 0   ;;  %v1139_v4 = vmov 0   ;;  %vm655_vm13 = vcmask 261120  }
 0x4ab   : > { %963 = vmatprep.subr.bf16.mxu0 %v1137_v1  ;;  %967 = vmatprep.mubr.msk.bf16.mxu0 %vm1138_vm12, %v1137_v1  ;;  %v1269_v3 = vld [vmem:[%s1224_s14] sm:$0xff]  ;;  %v1275_v7 = vld [vmem:[%s1224_s14 + $0x8] sm:$0xff]  ;;  %v700_v9 = vlaneseq  ;;  %vm730_vm0 = vcmask 64512   ;;  %vm794_vm5 = vcmask 7168   ;;  %vm805_vm6 = vcmask 0  }
 0x4ac   : > { %964 = vmatpush3.bf16.msra.mxu0 %v1043_v0  ;;  %1041 = vset.pattern.permute.xlu0 %v1139_v4  ;;  %v714_v5 = vadd.s32 4, %v1269_v3  ;;  %v1045_v6 = vld [vmem:[%s1229_s17] sm:$0xff]   ;;  %v715_v8 = vadd.s32 4, %v1275_v7  ;;  %vm745_vm3 = vcmp.lt.s32.totalorder %v1269_v3, 4  ;;  %vm746_vm4 = vcmp.lt.s32.totalorder %v1275_v7, 4 }
 0x4ad   : > { %965 = vmatprep.subr.bf16.mxu0 %v1137_v1  ;;  %1042 = vset.pattern.permute.xlu1 %v1139_v4  ;;  %v701_v10 = vand.u32 127, %v700_v9 }
 0x4ae   : > { %703 = vperm.xlu0 %1041, %v1269_v3   ;;  %717 = vperm.xlu1 %1042, %v714_v5  }
 0x4b0   : > { %966 = vmatpush3.bf16.msra.mxu0 %v1044_v2 }
 0x4b2   : > { %706 = vperm.xlu0 %1041, %v1275_v7   ;;  %720 = vperm.xlu1 %1042, %v715_v8  }
 0x4b3   : > { %968 = vmatmul.mubr.msk.bf16.vlgmr.msra.gmra.mxu0 %vm655_vm13, %v1045_v6 }
 0x529   : > { %v704_v11 = vpop.permute.xlu0 %703  ;;  %v718_v12 = vpop.permute.xlu1 %717 }
 0x52a   : > { %vm708_vm14 = vcmp.eq.s32.totalorder %v701_v10, %v704_v11  ;;  %vm722_vm15 = vcmp.eq.s32.totalorder %v701_v10, %v718_v12  ;;  %v920_v11 = vsel %vm745_vm3, 1.0, %v1137_v1 }
 0x52b   : > { %v916_v13 = vsel %vm708_vm14, 1.0, %v1137_v1  ;;  %v918_v16 = vsel %vm722_vm15, 1.0, %v1137_v1 }
 0x52d   : > { %v707_v14 = vpop.permute.xlu0 %706  ;;  %v721_v15 = vpop.permute.xlu1 %720 }
 0x52e   : > { %vm709_vm1 = vcmp.eq.s32.totalorder %v701_v10, %v707_v14  ;;  %vm723_vm2 = vcmp.eq.s32.totalorder %v701_v10, %v721_v15  ;;  %v921_v14 = vsel %vm746_vm4, 1.0, %v1137_v1 }
 0x52f   : > { %v917_v22 = vsel %vm709_vm1, 1.0, %v1137_v1  ;;  %v919_v23 = vsel %vm723_vm2, 1.0, %v1137_v1 }
 0x573   : > { %v693_v17 = vpop.f32.mrf.mxu0 }
 0x574   : > { %v728_v18 = vmul.f32 %v916_v13, %v693_v17  ;;  %v737_v20 = vmul.f32 %v918_v16, %v693_v17 }
 0x575   : > { %v969_v19 = vpop.f32.mrf.mxu0 }
 0x576   : > { %v731_v21 = vsel %vm730_vm0, %v728_v18, 0.0  ;;  %v739_v28 = vsel %vm730_vm0, %v737_v20, 0.0 }
 0x577   : > { %732 = vadd.xlane.f32.xlu0 %v731_v21  ;;  %v696_v24 = vpop.f32.mrf.mxu0 }
 0x578   : > { %v729_v25 = vmul.f32 %v917_v22, %v696_v24  ;;  %v738_v27 = vmul.f32 %v919_v23, %v696_v24  ;;  %v793_v24 = vld [vmem:[#allocation4] sm:$0x1] }
 0x579   : > { %v970_v26 = vpop.f32.mrf.mxu0 }
 0x57a   : > { %v734_v29 = vsel %vm730_vm0, %v729_v25, 0.0  ;;  %v742_v30 = vsel %vm730_vm0, %v738_v27, 0.0 }
 0x57b   : > { %740 = vadd.xlane.f32.xlu0 %v739_v28  ;;  %735 = vadd.xlane.f32.xlu1 %v734_v29 }
 0x57f   : > { %743 = vadd.xlane.f32.xlu0 %v742_v30 }
 0x600   : > { %v733_v31 = vpop.xlane.xlu0 %732 }
 0x601   : > { %v751_v32 = vsub.f32 0.0, %v733_v31 }
 0x603   : > { %v755_v33 = vand.u32 2147483647, %v751_v32  ;;  %v753_v63 = vmax.f32 %v751_v32, 0.0 }
 0x604   : > { %v741_v34 = vpop.xlane.xlu0 %740  ;;  %v736_v35 = vpop.xlane.xlu1 %735 }
 0x605   : > { %v757_v36 = vsub.f32 0.0, %v755_v33  ;;  %v773_v37 = vand.u32 2147483647, %v741_v34  ;;  %v752_v38 = vsub.f32 0.0, %v736_v35  ;;  %v771_v60 = vmax.f32 %v741_v34, 0.0 }
 0x607   : > { %v759_v39 = vmul.f32 1.442695, %v757_v36  ;;  %v775_v40 = vsub.f32 0.0, %v773_v37  ;;  %v756_v41 = vand.u32 2147483647, %v752_v38  ;;  %v754_v8 = vmax.f32 %v752_v38, 0.0 }
 0x608   : > { %v744_v42 = vpop.xlane.xlu0 %743 }
 0x609   : > { %1046 = vpow2.f32 %v759_v39  ;;  %v777_v43 = vmul.f32 1.442695, %v775_v40  ;;  %v758_v44 = vsub.f32 0.0, %v756_v41  ;;  %v774_v45 = vand.u32 2147483647, %v744_v42 }
 0x60a   : > { %v772_v9 = vmax.f32 %v744_v42, 0.0 }
 0x60b   : > { %1048 = vpow2.f32 %v777_v43  ;;  %v761_v46 = vmul.f32 1.442695, %v758_v44  ;;  %v776_v47 = vsub.f32 0.0, %v774_v45 }
 0x60d   : > { %1050 = vpow2.f32 %v761_v46  ;;  %v779_v48 = vmul.f32 1.442695, %v776_v47 }
 0x60f   : > { %1052 = vpow2.f32 %v779_v48 }
 0x616   : > { %v1047_v49 = vpop.eup %1046 }
 0x617   : > { %v763_v50 = vadd.f32 1.0, %v1047_v49 }
 0x618   : > { %v1049_v51 = vpop.eup %1048 }
 0x619   : > { %1054 = vlog2.f32 %v763_v50  ;;  %v781_v52 = vadd.f32 1.0, %v1049_v51 }
 0x61a   : > { %v1051_v53 = vpop.eup %1050 }
 0x61b   : > { %1056 = vlog2.f32 %v781_v52  ;;  %v764_v54 = vadd.f32 1.0, %v1051_v53 }
 0x61c   : > { %v1053_v55 = vpop.eup %1052 }
 0x61d   : > { %1058 = vlog2.f32 %v764_v54  ;;  %v782_v56 = vadd.f32 1.0, %v1053_v55 }
 0x61f   : > { %1060 = vlog2.f32 %v782_v56 }
 0x626   : > { %v1055_v57 = vpop.eup %1054 }
 0x627   : > { %v766_v59 = vmul.f32 0.6931472, %v1055_v57 }
 0x628   : > { %v1057_v58 = vpop.eup %1056 }
 0x629   : > { %v784_v61 = vmul.f32 0.6931472, %v1057_v58  ;;  %v769_v2 = vadd.f32 %v766_v59, %v753_v63 }
 0x62a   : > { %v1059_v62 = vpop.eup %1058 }
 0x62b   : > { %v787_v0 = vadd.f32 %v784_v61, %v771_v60  ;;  %v768_v4 = vmul.f32 0.6931472, %v1059_v62 }
 0x62c   : > { %v1061_v5 = vpop.eup %1060 }
 0x62d   : > { %v789_v6 = vadd.f32 %v787_v0, %v769_v2  ;;  %v786_v10 = vmul.f32 0.6931472, %v1061_v5  ;;  %v770_v12 = vadd.f32 %v768_v4, %v754_v8 }
 0x62f   : > { %v788_v13 = vadd.f32 %v786_v10, %v772_v9  ;;  %v791_v15 = vmul.f32 %v920_v11, %v789_v6 }
 0x631   : > { %v790_v16 = vadd.f32 %v788_v13, %v770_v12  ;;  %v795_v3 = vsel %vm794_vm5, %v791_v15, 0.0 }
 0x633   : > { %v792_v17 = vmul.f32 %v921_v14, %v790_v16 }
 0x635   : > { %v796_v18 = vsel %vm794_vm5, %v792_v17, 0.0 }
 0x636   : > { %v797_v19 = vadd.f32 %v796_v18, %v795_v3 }
 0x638   : > { %v798_v20 = vrot.slane %v797_v19, 4 }
 0x63a   : > { %v799_v21 = vadd.f32 %v798_v20, %v797_v19 }
 0x63c   : > { %v800_v7 = vrot.slane %v799_v21, 2 }
 0x63e   : > { %v801_v22 = vadd.f32 %v800_v7, %v799_v21 }
 0x640   : > { %v802_v23 = vrot.slane %v801_v22, 1 }
 0x642   : > { %v803_v25 = vadd.f32 %v802_v23, %v801_v22 }
 0x644   : > { %v804_v26 = vadd.f32 %v803_v25, %v793_v24 }
 0x646   : > { %806 = vst.msk [vmem:[#allocation4] sm:$0x1] %vm805_vm6, %v804_v26 }
 0x647 PF: > { %p807_p0 = pnand %p626_p12, %p404_p10 }
 0x649   : > { %810 = sbr.rel (%p807_p0) target bundleno = 1618 (0x652), region = 68 }
 0x64e   : > { %v811_v1 = vld [vmem:[#allocation4] sm:$0x1]  ;;  %vm813_vm7 = vcmask 0  }
 0x64f   : > { %v812_v27 = vmul.f32 0.025, %v811_v1 }
 0x651   : > { %814 = vst.msk [vmem:[#allocation5] sm:$0x1] %vm813_vm7, %v812_v27 }
 0x652 PF: > { %p1297_p1 = scmp.eq.s32.totalorder %s885_s29, 5  ;;  %s1140_s17 = smov [#allocation5]  }
 0x653   : > { %s822_s19 = sshll.u32 %s1140_s17, 4  ;;  %s823_s19 = int_to_ptr.vmem [resolvable:$true] %s822_s19 }
 0x654   : > { %s1062_s24 = scalar_lea.vmem %s823_s19, 16  ;;  %s1068_s25 = scalar_lea.vmem %s823_s19, 32 }
 0x655   : > { %p1063_p2 = scmp.ne.s32.totalorder %s823_s19, %s1062_s24  ;;  %p1069_p5 = scmp.lt.s32.totalorder %s823_s19, %s823_s19 }
 0x656   : > { %p1070_p6 = scmp.lt.s32.totalorder %s1068_s25, %s1062_s24 }
 0x657   : > { %p1064_p3 = pnand %p1063_p2, %p1297_p1 }
 0x658   : > { %p1071_p7 = por %p1070_p6, %p1069_p5 }
 0x659   : > { %p1065_p4 = pneg %p1064_p3 }
 0x65b   : > { %p1072_p8 = pnand %p1071_p7, %p1065_p4 }
 0x65d   : > { %1075 = shalt.err (!%p1072_p8)
}
 0x65e   : > { %972 = dma.vmem_to_hbm [thread:$0]  (%p1297_p1), %s823_s19, 16, %s1334_s7, [#allocation6]  }
 0x65f   : > { %1107 = dma.done.wait (%p1297_p1), [#allocation6], 16  }
 0x660   : > { %1109 = vsyncadd (%p1297_p1), [#allocation6], 4294967280 }
 0x661 PF: > { %s18_s28 = sadd.s32 1, %s1128_s28   ;;  %s1336_s24 = smov %s1120_s26 }
 0x662   : > { %p15_p9 = scmp.ge.s32.totalorder %s18_s28, 8   ;;  %s1337_s25 = smov %s1124_s27 }
 0x663   : > { %s1338_s26 = smov %s1341_s30  ;;  %s1339_s27 = smov %s1345_s8 }
 0x664   :  { %17 = sbr.rel (!%p15_p9) target bundleno = 3 (0x3), region = 98 }
 0x669   :  { %835 = vsyncpa [#allocation6], 1 }
 0x66a   :  { %837 = vsyncpa [#allocation6 + $0x1], 1 }

</bundles_post_ra>
